<compile_context>
chip_gen: v5e
topology: v5e:2x2
jax: 0.10.0
libtpu: 0.0.40
codegen_flags: <defaults>
</compile_context>

<pallas_src>
from functools import partial

import jax
import jax.numpy as jnp
from jax.experimental import pallas as pl
from jax.experimental.pallas import tpu as pltpu

_LANE = 128


# --------------------------------------------------------------------------- #
# Kernel
# --------------------------------------------------------------------------- #
def _quantize_kernel(x_ref, dist_rhs_ref, cbn_ref, gather_rhs_ref,
                     codes_ref, idx_ref, *, num_factors, num_codes,
                     distance_in_bf16):
    """One batch tile, all factors at once.

    x_ref:          (TB, MCp)  input slab, factors packed along lanes (zero padded)
    dist_rhs_ref:   (MCp, MN)  block-diagonal  -2 * cb_m^T  in block (m, m)
    cbn_ref:        (1,  MN)   per-code squared norms ||cb_{m,n}||^2
    gather_rhs_ref: (MN, MCp)  block-diagonal   cb_m        in block (m, m)
    codes_ref:      (TB, MCp)  quantized-codes slab (single lane-dense store)
    idx_ref:        (TB, M)    nearest-code index per (row, factor)
    """
    M, N = num_factors, num_codes
    TB = x_ref.shape[0]
    MN = M * N

    x = x_ref[...]
    rhs = dist_rhs_ref[...]
    if distance_in_bf16:
        x = x.astype(jnp.bfloat16)
        rhs = rhs.astype(jnp.bfloat16)

    # dist[b, m*N + n] = ||cb_mn||^2 - 2 <x_bm, cb_mn>  — argmin-equivalent to the
    # exact squared distance (the ||x_bm||^2 term is constant over n).
    dist = cbn_ref[...] + jax.lax.dot_general(
        x, rhs, dimension_numbers=(((1,), (0,)), ((), ())),
        preferred_element_type=jnp.float32)                       # (TB, MN) f32

    # Loop-invariant iotas, hoisted (broadcast_in_dim is not CSE'd by JAX).
    col_slab = jax.lax.broadcasted_iota(jnp.int32, (TB, MN), 1)   # slab lane ids
    col_n = jax.lax.broadcasted_iota(jnp.int32, (TB, N), 1)       # within-factor code ids
    fac = jax.lax.broadcasted_iota(jnp.int32, (TB, M), 1)         # factor ids

    onehot = jnp.zeros((TB, MN), jnp.float32)
    idx_all = jnp.zeros((TB, M), jnp.int32)
    # Only the tiny per-factor argmin is unrolled (cheap VPU/XLU work on N lanes);
    # all MXU work is the two packed block-diagonal dots.  For very large M convert
    # this loop into a fori_loop / a second grid axis to bound live ranges.
    for m in range(M):
        d_m = dist[:, m * N:(m + 1) * N]                          # (TB, N)
        d_min = jnp.min(d_m, axis=-1, keepdims=True)              # (TB, 1)
        idx_m = jnp.min(jnp.where(d_m == d_min, col_n, N),
                        axis=-1, keepdims=True)                   # first-min, (TB, 1)
        target = jnp.where(idx_m < N, idx_m + m * N, -1)          # guard all-NaN rows
        onehot = onehot + (col_slab == target).astype(jnp.float32)
        idx_all = jnp.where(fac == m, idx_m, idx_all)

    # Exact f32 gather of the selected codes: one block-diagonal MXU dot and a
    # single full-lane-width store per batch tile.
    codes = jnp.dot(onehot, gather_rhs_ref[...],
                    preferred_element_type=jnp.float32)           # (TB, MCp)
    codes_ref[...] = codes.astype(codes_ref.dtype)
    idx_ref[...] = idx_all                                        # one idx store per tile


# --------------------------------------------------------------------------- #
# Wrapper helpers
# --------------------------------------------------------------------------- #
def _round_up(x, m):
    return ((x + m - 1) // m) * m


def _tpu_vmem_capacity_bytes():
    try:
        return int(pltpu.get_tpu_info().vmem_capacity_bytes)
    except Exception:
        return 64 * 1024 * 1024          # conservative default (v7x per-core VMEM)


def _mxu_is_bf16_native():
    """True for bf16-native MXUs (v6e / v7x); False for v5e / older / unknown."""
    try:
        kind = jax.devices()[0].device_kind.lower()
    except Exception:
        return False
    return ("v6" in kind) or ("v7" in kind)


def _pick_block_b(batch, row_bytes, budget_bytes):
    """Sublane-aligned batch tile: largest that fits the VMEM budget, capped so
    there are >= 2 grid steps (v7x megacore / pipelining) when batch allows it."""
    if batch <= 8:
        return batch                                         # single full-array block
    max_rows = max(8, budget_bytes // max(1, 4 * row_bytes))  # 2 bufs x (in + codes)
    half = _round_up(-(-batch // 2), 8)                      # ceil(B/2), sublane aligned
    bb = min(512, max_rows, half)
    return max(8, (bb // 8) * 8)


# --------------------------------------------------------------------------- #
# Public entry point
# --------------------------------------------------------------------------- #
def factored_quantize(inputs, codebook, *, block_b=None, distance_in_bf16=None):
    """inputs [B,M,C] f32, codebook [M,N,C] f32 -> (codes [B,M,C] f32, idx [B,M] i32)."""
    B, M, C = inputs.shape
    Mcb, N, Ccb = codebook.shape
    assert (M, C) == (Mcb, Ccb), "codebook does not match inputs"

    if distance_in_bf16 is None:
        distance_in_bf16 = _mxu_is_bf16_native()   # per-generation default (v6e/v7x)

    MC, MN = M * C, M * N
    MCp = _round_up(MC, _LANE)                     # lane-align slabs and packed RHS

    # ---- packed block-diagonal operands (tiny; built once per call) ----------
    # NOTE: RHS footprint is O((M*C) * (M*N)); for very large M split factors into
    # groups along a second grid axis rather than one big block-diagonal matrix.
    eye_m = jnp.eye(M, dtype=codebook.dtype)
    dist_rhs = jnp.einsum('mf,mnc->mcfn', eye_m, -2.0 * codebook).reshape(MC, MN)
    gather_rhs = jnp.einsum('mf,mnc->mnfc', eye_m, codebook).reshape(MN, MC)
    cbn_row = jnp.sum(codebook * codebook, axis=-1).reshape(1, MN)
    if MCp != MC:
        dist_rhs = jnp.pad(dist_rhs, ((0, MCp - MC), (0, 0)))
        gather_rhs = jnp.pad(gather_rhs, ((0, 0), (0, MCp - MC)))

    # ---- batch tiling / VMEM budget ------------------------------------------
    itemsize = jnp.dtype(inputs.dtype).itemsize
    vmem_cap = _tpu_vmem_capacity_bytes()
    vmem_limit = int(min(0.75 * vmem_cap, 96 * 1024 * 1024))
    const_bytes = 2 * (2 * MCp * MN + MN) * 4      # double-buffered packed RHS + norms
    budget = max(1 << 20, vmem_limit // 2 - const_bytes)
    if block_b is None:
        block_b = _pick_block_b(B, MCp * itemsize, budget)
    Bp = _round_up(B, block_b)                     # pad batch instead of one-block fallback
    grid_b = Bp // block_b

    # Free, row-major-identical view; padding only when shapes are not aligned.
    x2 = inputs.reshape(B, MC)
    if MCp != MC or Bp != B:
        x2 = jnp.pad(x2, ((0, Bp - B), (0, MCp - MC)))

    kernel = partial(_quantize_kernel, num_factors=M, num_codes=N,
                     distance_in_bf16=distance_in_bf16)

    codes2, idx = pl.pallas_call(
        kernel,
        out_shape=(
            jax.ShapeDtypeStruct((Bp, MCp), inputs.dtype),
            jax.ShapeDtypeStruct((Bp, M), jnp.int32),
        ),
        grid_spec=pltpu.PrefetchScalarGridSpec(
            num_scalar_prefetch=0,
            grid=(grid_b,),
            in_specs=[
                pl.BlockSpec((block_b, MCp), lambda b: (b, 0)),   # input slab tile
                # Grid-constant operands, resident across batch tiles.
                # (On v7x one may add pipeline_mode=pl.Buffered(1) to halve their
                #  resident footprint; they are tiny here so the default is kept.)
                pl.BlockSpec((MCp, MN), lambda b: (0, 0)),        # -2*cb block-diagonal
                pl.BlockSpec((1, MN), lambda b: (0, 0)),          # ||cb||^2 row
                pl.BlockSpec((MN, MCp), lambda b: (0, 0)),        # gather block-diagonal
            ],
            out_specs=(
                pl.BlockSpec((block_b, MCp), lambda b: (b, 0)),   # codes slab (lane dense)
                pl.BlockSpec((block_b, M), lambda b: (b, 0)),     # indices
            ),
        ),
        compiler_params=pltpu.CompilerParams(
            dimension_semantics=("parallel",),     # batch tiles split across TCs (v7x)
            vmem_limit_bytes=vmem_limit,
        ),
    )(x2, dist_rhs, cbn_row, gather_rhs)

    if Bp != B or MCp != MC:
        codes2 = codes2[:B, :MC]
        idx = idx[:B]
    return codes2.reshape(B, M, C), idx


# --------------------------------------------------------------------------- #
# Codebook constructor + pure-JAX reference (mirrors the PyTorch forward)
# --------------------------------------------------------------------------- #
def make_codebook(num_factors, num_codes, embedding_size, dtype=jnp.float32):
    # Matches torch.linspace(-0.5, 0.5, num_codes).unsqueeze(0).unsqueeze(-1)
    #         .repeat(num_factors, 1, embedding_size)
    lin = jnp.linspace(-0.5, 0.5, num_codes, dtype=dtype)
    cb = jnp.broadcast_to(lin[None, :, None],
                          (num_factors, num_codes, embedding_size))
    return cb.astype(dtype)


def _reference(inputs, codebook):
    diff = inputs[:, :, None, :] - codebook[None, :, :, :]    # (B, M, N, C)
    dist = jnp.sum(diff * diff, axis=-1)                       # (B, M, N)
    idx = jnp.argmin(dist, axis=-1).astype(jnp.int32)          # (B, M)
    codes = jnp.take_along_axis(
        codebook[None], idx[:, :, None, None], axis=2)[:, :, 0, :]
    return codes, idx


# --------------------------------------------------------------------------- #
# Demo / correctness check
# --------------------------------------------------------------------------- #
if __name__ == "__main__":
    # Small shapes consistent with the module: B batch, M factors, N codes, C embed.
    B, M, N, C = 2, 4, 8, 32

    key = jax.random.PRNGKey(0)
    inputs = jax.random.normal(key, (B, M, C), dtype=jnp.float32) * 0.6
    codebook = make_codebook(M, N, C)

    # 1) Exact (f32-distance) run, checked against the squared-difference reference.
    codes, idx = factored_quantize(inputs, codebook, distance_in_bf16=False)
    jax.block_until_ready((codes, idx))
    assert codes.shape == (B, M, C) and idx.shape == (B, M)

    ref_codes, ref_idx = _reference(inputs, codebook)
    gathered = jnp.take_along_axis(
        codebook[None], idx[:, :, None, None], axis=2)[:, :, 0, :]
    assert bool(jnp.allclose(codes, gathered, atol=1e-6)), "codes != codebook[idx]"
    if bool(jnp.array_equal(idx, ref_idx)):
        assert bool(jnp.allclose(codes, ref_codes, atol=1e-6)), "codes mismatch vs reference"
    else:
        # The matmul-form distance may reorder exact ties; accept only (near-)ties.
        diff = inputs[:, :, None, :] - codebook[None]
        dist = jnp.sum(diff * diff, axis=-1)
        d_sel = jnp.take_along_axis(dist, idx[..., None], axis=-1)[..., 0]
        assert bool(jnp.all(d_sel <= dist.min(axis=-1) + 1e-5)), \
            "index mismatch vs reference beyond near-tie tolerance"

    # 2) Per-generation default (bf16 distance dot on v6e/v7x): emitted codes must
    #    still be exactly the codebook rows at whichever index the kernel selected.
    codes_auto, idx_auto = factored_quantize(inputs, codebook)
    jax.block_until_ready((codes_auto, idx_auto))
    assert codes_auto.shape == (B, M, C) and idx_auto.shape == (B, M)
    assert bool(jnp.all((idx_auto >= 0) & (idx_auto < N)))
    gathered_auto = jnp.take_along_axis(
        codebook[None], idx_auto[:, :, None, None], axis=2)[:, :, 0, :]
    assert bool(jnp.allclose(codes_auto, gathered_auto, atol=1e-6)), \
        "auto-mode codes != codebook[idx]"

    print("KERNEL_OK")
</pallas_src>

<mosaic_0001>
module attributes {stable_mosaic.version = 11 : i64} {
  func.func @_quantize_kernel(%arg0: i32, %arg1: memref<2x128xf32, #tpu.memory_space<vmem>>, %arg2: memref<128x32xf32, #tpu.memory_space<vmem>>, %arg3: memref<1x32xf32, #tpu.memory_space<vmem>>, %arg4: memref<32x128xf32, #tpu.memory_space<vmem>>, %arg5: memref<2x128xf32, #tpu.memory_space<vmem>>, %arg6: memref<2x4xi32, #tpu.memory_space<vmem>>) attributes {dimension_semantics = [#tpu.dimension_semantics<parallel>], iteration_bounds = array<i64: 1>, scalar_prefetch = 0 : i64, scratch_operands = 0 : i64, tpu.core_type = #tpu.core_type<tc>, window_params = [{transform_indices = @transform_0, window_bounds = array<i64: 2, 128>}, {pipeline_mode = #tpu.pipeline_mode<synchronous>, transform_indices = @transform_1, window_bounds = array<i64: 128, 32>}, {pipeline_mode = #tpu.pipeline_mode<synchronous>, transform_indices = @transform_2, window_bounds = array<i64: 1, 32>}, {pipeline_mode = #tpu.pipeline_mode<synchronous>, transform_indices = @transform_3, window_bounds = array<i64: 32, 128>}, {transform_indices = @transform_4, window_bounds = array<i64: 2, 128>}, {transform_indices = @transform_5, window_bounds = array<i64: 2, 4>}]} {
    %c0 = arith.constant 0 : index
    %c0_0 = arith.constant 0 : index
    %0 = vector.load %arg1[%c0, %c0_0] : memref<2x128xf32, #tpu.memory_space<vmem>>, vector<2x128xf32>
    %c0_1 = arith.constant 0 : index
    %c0_2 = arith.constant 0 : index
    %1 = vector.load %arg2[%c0_1, %c0_2] : memref<128x32xf32, #tpu.memory_space<vmem>>, vector<128x32xf32>
    %c0_3 = arith.constant 0 : index
    %c0_4 = arith.constant 0 : index
    %2 = vector.load %arg3[%c0_3, %c0_4] : memref<1x32xf32, #tpu.memory_space<vmem>>, vector<1x32xf32>
    %cst = arith.constant dense<0.000000e+00> : vector<2x32xf32>
    %3 = tpu.matmul %0, %1, %cst {dimension_numbers = #tpu.dot_dimension_numbers<[1], [0], [0], [1], [0, 0, 1, 1], [], []>} : vector<2x128xf32>, vector<128x32xf32>, vector<2x32xf32> -> vector<2x32xf32>
    %4 = vector.broadcast %2 : vector<1x32xf32> to vector<2x32xf32>
    %5 = arith.addf %4, %3 : vector<2x32xf32>
    %6 = tpu.iota {dimensions = array<i32: 1>} : vector<2x32xi32>
    %7 = tpu.iota {dimensions = array<i32: 1>} : vector<2x8xi32>
    %8 = tpu.iota {dimensions = array<i32: 1>} : vector<2x4xi32>
    %cst_5 = arith.constant 0.000000e+00 : f32
    %9 = vector.broadcast %cst_5 : f32 to vector<2x32xf32>
    %c0_i32 = arith.constant 0 : i32
    %10 = vector.broadcast %c0_i32 : i32 to vector<2x4xi32>
    %11 = vector.extract_strided_slice %5 {offsets = [0, 0], sizes = [2, 8], strides = [1, 1]} : vector<2x32xf32> to vector<2x8xf32>
    %cst_6 = arith.constant dense<0x7F800000> : vector<2xf32>
    %12 = vector.multi_reduction <minimumf>, %11, %cst_6 [1] : vector<2x8xf32> to vector<2xf32>
    %13 = vector.shape_cast %12 : vector<2xf32> to vector<2x1xf32>
    %14 = vector.broadcast %13 : vector<2x1xf32> to vector<2x8xf32>
    %15 = arith.cmpf oeq, %11, %14 : vector<2x8xf32>
    %c8_i32 = arith.constant 8 : i32
    %16 = vector.broadcast %c8_i32 : i32 to vector<2x8xi32>
    %17 = arith.select %15, %7, %16 : vector<2x8xi1>, vector<2x8xi32>
    %cst_7 = arith.constant dense<2147483647> : vector<2xi32>
    %18 = vector.multi_reduction <minsi>, %17, %cst_7 [1] : vector<2x8xi32> to vector<2xi32>
    %19 = vector.shape_cast %18 : vector<2xi32> to vector<2x1xi32>
    %c8_i32_8 = arith.constant 8 : i32
    %20 = vector.broadcast %c8_i32_8 : i32 to vector<2x1xi32>
    %21 = arith.cmpi slt, %19, %20 : vector<2x1xi32>
    %c0_i32_9 = arith.constant 0 : i32
    %22 = vector.broadcast %c0_i32_9 : i32 to vector<2x1xi32>
    %23 = arith.addi %19, %22 : vector<2x1xi32>
    %c-1_i32 = arith.constant -1 : i32
    %24 = vector.broadcast %c-1_i32 : i32 to vector<2x1xi32>
    %25 = arith.select %21, %23, %24 : vector<2x1xi1>, vector<2x1xi32>
    %26 = vector.broadcast %25 : vector<2x1xi32> to vector<2x32xi32>
    %27 = arith.cmpi eq, %6, %26 : vector<2x32xi32>
    %28 = arith.extui %27 : vector<2x32xi1> to vector<2x32xi32>
    %29 = arith.sitofp %28 : vector<2x32xi32> to vector<2x32xf32>
    %30 = arith.addf %9, %29 : vector<2x32xf32>
    %c0_i32_10 = arith.constant 0 : i32
    %31 = vector.broadcast %c0_i32_10 : i32 to vector<2x4xi32>
    %32 = arith.cmpi eq, %8, %31 : vector<2x4xi32>
    %33 = vector.shape_cast %19 : vector<2x1xi32> to vector<2x1xi32>
    %34 = vector.broadcast %33 : vector<2x1xi32> to vector<2x4xi32>
    %35 = arith.select %32, %34, %10 : vector<2x4xi1>, vector<2x4xi32>
    %36 = vector.extract_strided_slice %5 {offsets = [0, 8], sizes = [2, 8], strides = [1, 1]} : vector<2x32xf32> to vector<2x8xf32>
    %cst_11 = arith.constant dense<0x7F800000> : vector<2xf32>
    %37 = vector.multi_reduction <minimumf>, %36, %cst_11 [1] : vector<2x8xf32> to vector<2xf32>
    %38 = vector.shape_cast %37 : vector<2xf32> to vector<2x1xf32>
    %39 = vector.broadcast %38 : vector<2x1xf32> to vector<2x8xf32>
    %40 = arith.cmpf oeq, %36, %39 : vector<2x8xf32>
    %c8_i32_12 = arith.constant 8 : i32
    %41 = vector.broadcast %c8_i32_12 : i32 to vector<2x8xi32>
    %42 = arith.select %40, %7, %41 : vector<2x8xi1>, vector<2x8xi32>
    %cst_13 = arith.constant dense<2147483647> : vector<2xi32>
    %43 = vector.multi_reduction <minsi>, %42, %cst_13 [1] : vector<2x8xi32> to vector<2xi32>
    %44 = vector.shape_cast %43 : vector<2xi32> to vector<2x1xi32>
    %c8_i32_14 = arith.constant 8 : i32
    %45 = vector.broadcast %c8_i32_14 : i32 to vector<2x1xi32>
    %46 = arith.cmpi slt, %44, %45 : vector<2x1xi32>
    %c8_i32_15 = arith.constant 8 : i32
    %47 = vector.broadcast %c8_i32_15 : i32 to vector<2x1xi32>
    %48 = arith.addi %44, %47 : vector<2x1xi32>
    %c-1_i32_16 = arith.constant -1 : i32
    %49 = vector.broadcast %c-1_i32_16 : i32 to vector<2x1xi32>
    %50 = arith.select %46, %48, %49 : vector<2x1xi1>, vector<2x1xi32>
    %51 = vector.broadcast %50 : vector<2x1xi32> to vector<2x32xi32>
    %52 = arith.cmpi eq, %6, %51 : vector<2x32xi32>
    %53 = arith.extui %52 : vector<2x32xi1> to vector<2x32xi32>
    %54 = arith.sitofp %53 : vector<2x32xi32> to vector<2x32xf32>
    %55 = arith.addf %30, %54 : vector<2x32xf32>
    %c1_i32 = arith.constant 1 : i32
    %56 = vector.broadcast %c1_i32 : i32 to vector<2x4xi32>
    %57 = arith.cmpi eq, %8, %56 : vector<2x4xi32>
    %58 = vector.shape_cast %44 : vector<2x1xi32> to vector<2x1xi32>
    %59 = vector.broadcast %58 : vector<2x1xi32> to vector<2x4xi32>
    %60 = arith.select %57, %59, %35 : vector<2x4xi1>, vector<2x4xi32>
    %61 = vector.extract_strided_slice %5 {offsets = [0, 16], sizes = [2, 8], strides = [1, 1]} : vector<2x32xf32> to vector<2x8xf32>
    %cst_17 = arith.constant dense<0x7F800000> : vector<2xf32>
    %62 = vector.multi_reduction <minimumf>, %61, %cst_17 [1] : vector<2x8xf32> to vector<2xf32>
    %63 = vector.shape_cast %62 : vector<2xf32> to vector<2x1xf32>
    %64 = vector.broadcast %63 : vector<2x1xf32> to vector<2x8xf32>
    %65 = arith.cmpf oeq, %61, %64 : vector<2x8xf32>
    %c8_i32_18 = arith.constant 8 : i32
    %66 = vector.broadcast %c8_i32_18 : i32 to vector<2x8xi32>
    %67 = arith.select %65, %7, %66 : vector<2x8xi1>, vector<2x8xi32>
    %cst_19 = arith.constant dense<2147483647> : vector<2xi32>
    %68 = vector.multi_reduction <minsi>, %67, %cst_19 [1] : vector<2x8xi32> to vector<2xi32>
    %69 = vector.shape_cast %68 : vector<2xi32> to vector<2x1xi32>
    %c8_i32_20 = arith.constant 8 : i32
    %70 = vector.broadcast %c8_i32_20 : i32 to vector<2x1xi32>
    %71 = arith.cmpi slt, %69, %70 : vector<2x1xi32>
    %c16_i32 = arith.constant 16 : i32
    %72 = vector.broadcast %c16_i32 : i32 to vector<2x1xi32>
    %73 = arith.addi %69, %72 : vector<2x1xi32>
    %c-1_i32_21 = arith.constant -1 : i32
    %74 = vector.broadcast %c-1_i32_21 : i32 to vector<2x1xi32>
    %75 = arith.select %71, %73, %74 : vector<2x1xi1>, vector<2x1xi32>
    %76 = vector.broadcast %75 : vector<2x1xi32> to vector<2x32xi32>
    %77 = arith.cmpi eq, %6, %76 : vector<2x32xi32>
    %78 = arith.extui %77 : vector<2x32xi1> to vector<2x32xi32>
    %79 = arith.sitofp %78 : vector<2x32xi32> to vector<2x32xf32>
    %80 = arith.addf %55, %79 : vector<2x32xf32>
    %c2_i32 = arith.constant 2 : i32
    %81 = vector.broadcast %c2_i32 : i32 to vector<2x4xi32>
    %82 = arith.cmpi eq, %8, %81 : vector<2x4xi32>
    %83 = vector.shape_cast %69 : vector<2x1xi32> to vector<2x1xi32>
    %84 = vector.broadcast %83 : vector<2x1xi32> to vector<2x4xi32>
    %85 = arith.select %82, %84, %60 : vector<2x4xi1>, vector<2x4xi32>
    %86 = vector.extract_strided_slice %5 {offsets = [0, 24], sizes = [2, 8], strides = [1, 1]} : vector<2x32xf32> to vector<2x8xf32>
    %cst_22 = arith.constant dense<0x7F800000> : vector<2xf32>
    %87 = vector.multi_reduction <minimumf>, %86, %cst_22 [1] : vector<2x8xf32> to vector<2xf32>
    %88 = vector.shape_cast %87 : vector<2xf32> to vector<2x1xf32>
    %89 = vector.broadcast %88 : vector<2x1xf32> to vector<2x8xf32>
    %90 = arith.cmpf oeq, %86, %89 : vector<2x8xf32>
    %c8_i32_23 = arith.constant 8 : i32
    %91 = vector.broadcast %c8_i32_23 : i32 to vector<2x8xi32>
    %92 = arith.select %90, %7, %91 : vector<2x8xi1>, vector<2x8xi32>
    %cst_24 = arith.constant dense<2147483647> : vector<2xi32>
    %93 = vector.multi_reduction <minsi>, %92, %cst_24 [1] : vector<2x8xi32> to vector<2xi32>
    %94 = vector.shape_cast %93 : vector<2xi32> to vector<2x1xi32>
    %c8_i32_25 = arith.constant 8 : i32
    %95 = vector.broadcast %c8_i32_25 : i32 to vector<2x1xi32>
    %96 = arith.cmpi slt, %94, %95 : vector<2x1xi32>
    %c24_i32 = arith.constant 24 : i32
    %97 = vector.broadcast %c24_i32 : i32 to vector<2x1xi32>
    %98 = arith.addi %94, %97 : vector<2x1xi32>
    %c-1_i32_26 = arith.constant -1 : i32
    %99 = vector.broadcast %c-1_i32_26 : i32 to vector<2x1xi32>
    %100 = arith.select %96, %98, %99 : vector<2x1xi1>, vector<2x1xi32>
    %101 = vector.broadcast %100 : vector<2x1xi32> to vector<2x32xi32>
    %102 = arith.cmpi eq, %6, %101 : vector<2x32xi32>
    %103 = arith.extui %102 : vector<2x32xi1> to vector<2x32xi32>
    %104 = arith.sitofp %103 : vector<2x32xi32> to vector<2x32xf32>
    %105 = arith.addf %80, %104 : vector<2x32xf32>
    %c3_i32 = arith.constant 3 : i32
    %106 = vector.broadcast %c3_i32 : i32 to vector<2x4xi32>
    %107 = arith.cmpi eq, %8, %106 : vector<2x4xi32>
    %108 = vector.shape_cast %94 : vector<2x1xi32> to vector<2x1xi32>
    %109 = vector.broadcast %108 : vector<2x1xi32> to vector<2x4xi32>
    %110 = arith.select %107, %109, %85 : vector<2x4xi1>, vector<2x4xi32>
    %c0_27 = arith.constant 0 : index
    %c0_28 = arith.constant 0 : index
    %111 = vector.load %arg4[%c0_27, %c0_28] : memref<32x128xf32, #tpu.memory_space<vmem>>, vector<32x128xf32>
    %cst_29 = arith.constant dense<0.000000e+00> : vector<2x128xf32>
    %112 = tpu.matmul %105, %111, %cst_29 {dimension_numbers = #tpu.dot_dimension_numbers<[1], [0], [0], [1], [0, 0, 1, 1], [], []>} : vector<2x32xf32>, vector<32x128xf32>, vector<2x128xf32> -> vector<2x128xf32>
    %c0_30 = arith.constant 0 : index
    %c0_31 = arith.constant 0 : index
    %113 = vector.load %arg5[%c0_30, %c0_31] : memref<2x128xf32, #tpu.memory_space<vmem>>, vector<2x128xf32>
    tpu.vector_store %arg5[%c0_30, %c0_31], %112 {strides = array<i32>} : memref<2x128xf32, #tpu.memory_space<vmem>>, vector<2x128xf32>,
    %c0_32 = arith.constant 0 : index
    %c0_33 = arith.constant 0 : index
    %114 = vector.load %arg6[%c0_32, %c0_33] : memref<2x4xi32, #tpu.memory_space<vmem>>, vector<2x4xi32>
    tpu.vector_store %arg6[%c0_32, %c0_33], %110 {strides = array<i32>} : memref<2x4xi32, #tpu.memory_space<vmem>>, vector<2x4xi32>,
    return
  }
  func.func @transform_0(%arg0: i32) -> (i32, i32) {
    %c0_i32 = arith.constant 0 : i32
    %c0_i32_0 = arith.constant 0 : i32
    return %arg0, %c0_i32 : i32, i32
  }
  func.func @transform_1(%arg0: i32) -> (i32, i32) {
    %c0_i32 = arith.constant 0 : i32
    %c0_i32_0 = arith.constant 0 : i32
    %c0_i32_1 = arith.constant 0 : i32
    return %c0_i32, %c0_i32_0 : i32, i32
  }
  func.func @transform_2(%arg0: i32) -> (i32, i32) {
    %c0_i32 = arith.constant 0 : i32
    %c0_i32_0 = arith.constant 0 : i32
    %c0_i32_1 = arith.constant 0 : i32
    return %c0_i32, %c0_i32_0 : i32, i32
  }
  func.func @transform_3(%arg0: i32) -> (i32, i32) {
    %c0_i32 = arith.constant 0 : i32
    %c0_i32_0 = arith.constant 0 : i32
    %c0_i32_1 = arith.constant 0 : i32
    return %c0_i32, %c0_i32_0 : i32, i32
  }
  func.func @transform_4(%arg0: i32) -> (i32, i32) {
    %c0_i32 = arith.constant 0 : i32
    %c0_i32_0 = arith.constant 0 : i32
    return %arg0, %c0_i32 : i32, i32
  }
  func.func @transform_5(%arg0: i32) -> (i32, i32) {
    %c0_i32 = arith.constant 0 : i32
    %c0_i32_0 = arith.constant 0 : i32
    return %arg0, %c0_i32 : i32, i32
  }
}

</mosaic_0001>

<bundles_post_ra>
// kernel: tpu_custom_call.1
= control target key start
LH: loop header
LB: loop body
LE: loop exit
PB: predicated region body
PF: predicated region fallthrough
CT: control target
= control target key end

     0   :  { %11 = vsyncpa [#allocation3], 0  ;;  %v63_v2 = vlaneseq  ;;  %s317_s26 = smov 8   ;;  %s318_s27 = smov 16   ;;  %s447_s0 = inlined_call_operand.vmem [shape: f32[2,128], index: 0, kind: input, shape index: {}]   ;;  %s448_s1 = inlined_call_operand.vmem [shape: f32[128,32], index: 1, kind: input, shape index: {}]   ;;  %s449_s2 = inlined_call_operand.vmem [shape: f32[1,32], index: 2, kind: input, shape index: {}]   ;;  %s450_s3 = inlined_call_operand.vmem [shape: f32[32,128], index: 3, kind: input, shape index: {}]   ;;  %s451_s4 = inlined_call_operand.hbm [shape: f32[2,128], index: 4, kind: output, shape index: {0}]   ;;  %s452_s5 = inlined_call_operand.hbm [shape: s32[2,4], index: 5, kind: output, shape index: {1}]  }
   0x1   :  { %v37_v0 = vld [vmem:[%s448_s1 + $0x78] sm:$0xff]  ;;  %v36_v1 = vld [vmem:[%s448_s1 + $0x70] sm:$0xff]  ;;  %v35_v3 = vld [vmem:[%s448_s1 + $0x68] sm:$0xff] }
   0x2   :  { %39 = vmatpush.msra.mxu0 %v37_v0  ;;  %v362_v4 = vand.u32 127, %v63_v2  ;;  %v34_v5 = vld [vmem:[%s448_s1 + $0x60] sm:$0xff]  ;;  %v33_v6 = vld [vmem:[%s448_s1 + $0x58] sm:$0xff] }
   0x4   :  { %40 = vmatpush.msra.mxu0 %v36_v1  ;;  %99 = vrot.lane.b32.xlu1 %v362_v4, %s317_s26 }
   0x5   :  { %131 = vrot.lane.b32.xlu2 %v362_v4, %s318_s27 }
   0x6   :  { %41 = vmatpush.msra.mxu0 %v35_v3 }
   0x7   :  { %12 = vsyncpa [#allocation5], 0  ;;  %v32_v7 = vld [vmem:[%s448_s1 + $0x50] sm:$0xff]  ;;  %v31_v8 = vld [vmem:[%s448_s1 + $0x48] sm:$0xff]  ;;  %vm158_vm0 = vcmask 255168   ;;  %vm126_vm1 = vcmask 189568  }
   0x8   :  { %42 = vmatpush.msra.mxu0 %v34_v5  ;;  %v30_v9 = vld [vmem:[%s448_s1 + $0x40] sm:$0xff]  ;;  %v29_v10 = vld [vmem:[%s448_s1 + $0x38] sm:$0xff]  ;;  %v28_v11 = vld [vmem:[%s448_s1 + $0x30] sm:$0xff]  ;;  %vm94_vm2 = vcmask 123968   ;;  %vm65_vm3 = vcmask 58368   ;;  %vm92_vm13 = vcmp.eq.s32.totalorder %v362_v4, 0 }
   0x9   :  { %v27_v12 = vld [vmem:[%s448_s1 + $0x28] sm:$0xff]  ;;  %v26_v13 = vld [vmem:[%s448_s1 + $0x20] sm:$0xff]  ;;  %v25_v14 = vld [vmem:[%s448_s1 + $0x18] sm:$0xff]  ;;  %vm124_vm14 = vcmp.eq.s32.totalorder %v362_v4, 1  ;;  %s239_s15 = sshll.u32 %s452_s5, 4  ;;  %s322_s16 = smov [#allocation2]   ;;  %s240_s15 = int_to_ptr.hbm [resolvable:$true] %s239_s15 }
   0xa   :  { %43 = vmatpush.msra.mxu0 %v33_v6  ;;  %v24_v15 = vld [vmem:[%s448_s1 + $0x10] sm:$0xff]  ;;  %v23_v16 = vld [vmem:[%s448_s1 + $0x8] sm:$0xff]  ;;  %v22_v17 = vld [vmem:[%s448_s1] sm:$0xff]  ;;  %s226_s17 = sshll.u32 %s322_s16, 4  ;;  %s228_s20 = sshll.u32 %s451_s4, 4  ;;  %s227_s17 = int_to_ptr.vmem [resolvable:$true] %s226_s17  ;;  %s229_s20 = int_to_ptr.hbm [resolvable:$true] %s228_s20 }
   0xb   :  { %v21_v18 = vld [vmem:[%s447_s0] sm:$0x3]  ;;  %s319_s0 = smov 24   ;;  %v193_v2 = vld [vmem:[%s450_s3 + $0x18] sm:$0xff]  ;;  %v192_v3 = vld [vmem:[%s450_s3 + $0x10] sm:$0xff] }
   0xc   :  { %44 = vmatpush.msra.mxu0 %v32_v7  ;;  %v264_v19 = vld [vmem:[%s449_s2] ss:$0 sm:$0xff]  ;;  %210 = vmatpush.msra.mxu1 %v193_v2  ;;  %v191_v6 = vld [vmem:[%s450_s3 + $0x8] sm:$0xff] }
   0xe   :  { %45 = vmatpush.msra.mxu0 %v31_v8  ;;  %211 = vmatpush.msra.mxu1 %v192_v3 }
  0x10   :  { %46 = vmatpush.msra.mxu0 %v30_v9  ;;  %v190_v9 = vld [vmem:[%s450_s3] sm:$0xff]  ;;  %212 = vmatpush.msra.mxu1 %v191_v6  ;;  %s321_s3 = smov [#allocation4]  }
  0x11   :  { %s237_s12 = sshll.u32 %s321_s3, 4  ;;  %s238_s12 = int_to_ptr.vmem [resolvable:$true] %s237_s12 }
  0x12   :  { %47 = vmatpush.msra.mxu0 %v29_v10  ;;  %213 = vmatpush.msra.mxu1 %v190_v9 }
  0x14   :  { %48 = vmatpush.msra.mxu0 %v28_v11 }
  0x16   :  { %49 = vmatpush.msra.mxu0 %v27_v12 }
  0x18   :  { %50 = vmatpush.msra.mxu0 %v26_v13 }
  0x1a   :  { %51 = vmatpush.msra.mxu0 %v25_v14 }
  0x1c   :  { %52 = vmatpush.msra.mxu0 %v24_v15 }
  0x1e   :  { %53 = vmatpush.msra.mxu0 %v23_v16 }
  0x20   :  { %54 = vmatpush.msra.mxu0 %v22_v17 }
  0x21   :  { %55 = vmatmul.f32.vlgmr.msra.gmra.mxu0 %v21_v18 }
  0x5f   :  { %v132_v28 = vpop.permute.xlu2 %131 }
  0x76   :  { %v100_v26 = vpop.permute.xlu1 %99 }
  0x9e   :  { %v56_v20 = vpop.f32.mrf.mxu0 }
  0x9f   :  { %v62_v21 = vadd.f32 %v264_v19, %v56_v20 }
  0xa1   :  { %v159_v22 = vsel %vm158_vm0, %v62_v21, inf  ;;  %v127_v23 = vsel %vm126_vm1, %v62_v21, inf  ;;  %v95_v24 = vsel %vm94_vm2, %v62_v21, inf  ;;  %v66_v25 = vsel %vm65_vm3, %v62_v21, inf }
  0xa2   :  { %160 = vmin.xlane.f32.xlu2 %v159_v22  ;;  %128 = vmin.xlane.f32.xlu1 %v127_v23 }
  0xa3   :  { %96 = vmin.xlane.f32.xlu0 %v95_v24 }
  0xab   :  { %67 = vmin.xlane.f32.xlu0 %v66_v25  ;;  %v320_v25 = vmov 0.0  }
  0xbf   :  { %163 = vrot.lane.b32.xlu0 %v362_v4, %s319_s0 }
 0x115   :  { %v129_v27 = vpop.xlane.xlu1 %128  ;;  %v161_v43 = vpop.xlane.xlu2 %160 }
 0x116   :  { %vm130_vm4 = vcmp.eq.f32.partialorder %v62_v21, %v129_v27  ;;  %v97_v29 = vpop.xlane.xlu0 %96  ;;  %vm162_vm7 = vcmp.eq.f32.partialorder %v62_v21, %v161_v43 }
 0x117   :  { %v133_v30 = vsel %vm130_vm4, %v132_v28, 8  ;;  %vm98_vm5 = vcmp.eq.f32.partialorder %v62_v21, %v97_v29 }
 0x118   :  { %v134_v31 = vsel %vm126_vm1, %v133_v30, 2147483647  ;;  %v101_v32 = vsel %vm98_vm5, %v100_v26, 8  ;;  %vm188_vm5 = vcmp.eq.s32.totalorder %v362_v4, 3 }
 0x119   :  { %v102_v33 = vsel %vm94_vm2, %v101_v32, 2147483647  ;;  %v136_v34 = vshra.s32 %v134_v31, 16  ;;  %v135_v55 = vand.u32 65535, %v134_v31 }
 0x11a   :  { %v104_v35 = vshra.s32 %v102_v33, 16  ;;  %v103_v49 = vand.u32 65535, %v102_v33 }
 0x11b   :  { %v138_v36 = vcvt.s32.f32 %v136_v34  ;;  %v137_v58 = vcvt.s32.f32 %v135_v55 }
 0x11c   :  { %v106_v37 = vcvt.s32.f32 %v104_v35  ;;  %v105_v51 = vcvt.s32.f32 %v103_v49 }
 0x11d   :  { %139 = vmin.xlane.f32.xlu1 %v138_v36 }
 0x11e   :  { %107 = vmin.xlane.f32.xlu0 %v106_v37  ;;  %v68_v38 = vpop.xlane.xlu0 %67 }
 0x11f   :  { %vm69_vm6 = vcmp.eq.f32.partialorder %v62_v21, %v68_v38 }
 0x120   :  { %v70_v39 = vsel %vm69_vm6, %v362_v4, 8  ;;  %vm219_vm6 = vcmask 25600  }
 0x121   :  { %v71_v40 = vsel %vm65_vm3, %v70_v39, 2147483647  ;;  %vm156_vm3 = vcmp.eq.s32.totalorder %v362_v4, 2 }
 0x122   :  { %v73_v41 = vshra.s32 %v71_v40, 16  ;;  %v72_v54 = vand.u32 65535, %v71_v40 }
 0x124   :  { %v75_v42 = vcvt.s32.f32 %v73_v41  ;;  %v74_v57 = vcvt.s32.f32 %v72_v54 }
 0x126   :  { %76 = vmin.xlane.f32.xlu2 %v75_v42 }
 0x131   :  { %v164_v44 = vpop.permute.xlu0 %163 }
 0x132   :  { %v165_v45 = vsel %vm162_vm7, %v164_v44, 8 }
 0x133   :  { %v166_v46 = vsel %vm158_vm0, %v165_v45, 2147483647 }
 0x134   :  { %v168_v47 = vshra.s32 %v166_v46, 16  ;;  %v167_v61 = vand.u32 65535, %v166_v46 }
 0x136   :  { %v170_v48 = vcvt.s32.f32 %v168_v47  ;;  %v169_v63 = vcvt.s32.f32 %v167_v61 }
 0x138   :  { %171 = vmin.xlane.f32.xlu2 %v170_v48 }
 0x190   :  { %v140_v53 = vpop.xlane.xlu1 %139 }
 0x191   :  { %v108_v50 = vpop.xlane.xlu0 %107  ;;  %vm141_vm9 = vcmp.eq.f32.partialorder %v138_v36, %v140_v53  ;;  %v146_v18 = vcvt.f32.s32 %v140_v53 }
 0x192   :  { %vm109_vm8 = vcmp.eq.f32.partialorder %v106_v37, %v108_v50  ;;  %v142_v60 = vsel %vm141_vm9, %v137_v58, inf  ;;  %v114_v1 = vcvt.f32.s32 %v108_v50  ;;  %vm194_vm9 = vcmask 261120  }
 0x193   :  { %v110_v52 = vsel %vm109_vm8, %v105_v51, inf  ;;  %v147_v24 = vshll.u32 %v146_v18, 16 }
 0x194   :  { %111 = vmin.xlane.f32.xlu1 %v110_v52  ;;  %v115_v7 = vshll.u32 %v114_v1, 16 }
 0x199   :  { %v77_v56 = vpop.xlane.xlu2 %76 }
 0x19a   :  { %vm78_vm10 = vcmp.eq.f32.partialorder %v75_v42, %v77_v56  ;;  %v83_v11 = vcvt.f32.s32 %v77_v56 }
 0x19b   :  { %v79_v59 = vsel %vm78_vm10, %v74_v57, inf }
 0x19c   :  { %80 = vmin.xlane.f32.xlu2 %v79_v59  ;;  %143 = vmin.xlane.f32.xlu1 %v142_v60  ;;  %v84_v14 = vshll.u32 %v83_v11, 16 }
 0x1ab   :  { %v172_v62 = vpop.xlane.xlu2 %171 }
 0x1ac   :  { %vm173_vm11 = vcmp.eq.f32.partialorder %v170_v48, %v172_v62  ;;  %v178_v31 = vcvt.f32.s32 %v172_v62 }
 0x1ad   :  { %v174_v0 = vsel %vm173_vm11, %v169_v63, inf }
 0x1ae   :  { %175 = vmin.xlane.f32.xlu2 %v174_v0  ;;  %v179_v34 = vshll.u32 %v178_v31, 16 }
 0x207   :  { %v112_v5 = vpop.xlane.xlu1 %111 }
 0x208   :  { %v113_v8 = vcvt.f32.s32 %v112_v5 }
 0x20a   :  { %v116_v10 = vadd.s32 %v115_v7, %v113_v8 }
 0x20c   :  { %v118_v12 = vadd.s32 8, %v116_v10  ;;  %vm117_vm12 = vcmp.lt.s32.totalorder %v116_v10, 8 }
 0x20e   :  { %v119_v16 = vsel %vm117_vm12, %v118_v12, 4294967295 }
 0x20f   :  { %v81_v13 = vpop.xlane.xlu2 %80  ;;  %v144_v17 = vpop.xlane.xlu1 %143  ;;  %vm120_vm15 = vcmp.eq.s32.totalorder %v362_v4, %v119_v16 }
 0x210   :  { %v82_v15 = vcvt.f32.s32 %v81_v13  ;;  %v145_v21 = vcvt.f32.s32 %v144_v17  ;;  %v254_v27 = vsel %vm120_vm15, 1.0, %v320_v25 }
 0x212   :  { %v85_v19 = vadd.s32 %v84_v14, %v82_v15  ;;  %v148_v28 = vadd.s32 %v147_v24, %v145_v21 }
 0x214   :  { %vm86_vm0 = vcmp.lt.s32.totalorder %v85_v19, 8  ;;  %v93_v20 = vsel %vm92_vm13, %v85_v19, 0  ;;  %v150_v30 = vadd.s32 16, %v148_v28  ;;  %vm149_vm2 = vcmp.lt.s32.totalorder %v148_v28, 8 }
 0x215   :  { %v87_v22 = vsel %vm86_vm0, %v85_v19, 4294967295  ;;  %v125_v23 = vsel %vm124_vm14, %v116_v10, %v93_v20 }
 0x216   :  { %vm88_vm1 = vcmp.eq.s32.totalorder %v362_v4, %v87_v22  ;;  %v151_v32 = vsel %vm149_vm2, %v150_v30, 4294967295  ;;  %v157_v37 = vsel %vm156_vm3, %v148_v28, %v125_v23 }
 0x217   :  { %v253_v26 = vsel %vm88_vm1, 1.0, %v320_v25  ;;  %vm152_vm4 = vcmp.eq.s32.totalorder %v362_v4, %v151_v32 }
 0x218   :  { %v123_v29 = vadd.f32 %v254_v27, %v253_v26  ;;  %v255_v39 = vsel %vm152_vm4, 1.0, %v320_v25 }
 0x21a   :  { %v155_v42 = vadd.f32 %v255_v39, %v123_v29 }
 0x221   :  { %v176_v33 = vpop.xlane.xlu2 %175 }
 0x222   :  { %v177_v35 = vcvt.f32.s32 %v176_v33 }
 0x224   :  { %v180_v36 = vadd.s32 %v179_v34, %v177_v35 }
 0x226   :  { %vm181_vm7 = vcmp.lt.s32.totalorder %v180_v36, 8  ;;  %v182_v38 = vadd.s32 24, %v180_v36  ;;  %v189_v40 = vsel %vm188_vm5, %v180_v36, %v157_v37 }
 0x227   :  { %220 = vst.msk [vmem:[#allocation4] sm:$0x3] %vm219_vm6, %v189_v40 }
 0x228   :  { %v183_v41 = vsel %vm181_vm7, %v182_v38, 4294967295  ;;  %242 = dma.vmem_to_hbm [thread:$0]  %s238_s12, 32, %s240_s15, [#allocation5]  }
 0x229   :  { %vm184_vm8 = vcmp.eq.s32.totalorder %v362_v4, %v183_v41 }
 0x22a   :  { %v256_v43 = vsel %vm184_vm8, 1.0, %v320_v25 }
 0x22b   :  { %v187_v44 = vadd.f32 %v256_v43, %v155_v42 }
 0x22d   :  { %257 = vmatmul.msk.f32.vlgmr.msra.gmra.mxu1 %vm194_vm9, %v187_v44 }
 0x2aa   :  { %v215_v4 = vpop.f32.mrf.mxu1 }
 0x2ab   :  { %218 = vst [vmem:[#allocation2] sm:$0x3] %v215_v4 }
 0x2ac   :  { %231 = dma.vmem_to_hbm [thread:$0]  %s227_s17, 32, %s229_s20, [#allocation3]  }
 0x2ad   :  { %313 = dma.done.wait [#allocation3], 32  }
 0x2ae   :  { %314 = vsyncadd [#allocation3], 4294967264 }
 0x2af   :  { %315 = dma.done.wait [#allocation5], 32  }
 0x2b0   :  { %316 = vsyncadd [#allocation5], 4294967264 }
 0x2b1   :  { %251 = vsyncpa [#allocation3], 1 }
 0x2b2   :  { %252 = vsyncpa [#allocation5], 1 }

</bundles_post_ra>
